<compile_context>
chip_gen: v7x
topology: tpu7x:2x2x1
jax: 0.10.0
libtpu: 0.0.40
codegen_flags: <defaults>
</compile_context>

<pallas_src>
import functools

import jax
import jax.numpy as jnp
from jax.experimental import pallas as pl
from jax.experimental.pallas import tpu as pltpu

_LANE = 128
_SUBLANE = 8


def _round_up(x, m):
    return (x + m - 1) // m * m


# ---------------------------------------------------------------------------
# Fused Pallas kernel: whole MLP for one row-tile of the batch
# ---------------------------------------------------------------------------
def _fused_mlp_kernel(*refs, num_layers, hid_true, out_true, sigmoid):
    """refs = (x, w0, b0, ..., w_last, b_last, gamma, beta, o).

    Hidden weights are (K, hid_pad) bf16 (first layer keeps true K=in_ch),
    hidden biases (1, hid_pad) f32.  Final weight is torch-layout
    (out_pad8, K) bf16, final bias (out_pad8, 1) f32.  Output tile is
    (out_true, TN): batch on lanes -> lane-dense, pure-payload writeback.
    """
    x_ref = refs[0]
    o_ref = refs[-1]
    wb = refs[1:-3]

    h = x_ref[...].astype(jnp.float32)            # (TN, K0) f32 activation

    if num_layers > 1:
        gamma = refs[-3][...]                     # (1, hid_pad) f32, hoisted
        beta = refs[-2][...]
        hid_pad = gamma.shape[-1]
        inv_h = 1.0 / float(hid_true)             # LN stats over TRUE width
        ln_mask = (jax.lax.broadcasted_iota(jnp.int32, (1, hid_pad), 1)
                   < hid_true)

        # Static (fully unrolled) loop over hidden layers.
        for layer in range(num_layers - 1):
            w = wb[2 * layer][...]                # bf16 (K, hid_pad)
            b = wb[2 * layer + 1][...]            # f32  (1, hid_pad)
            z = jnp.dot(h.astype(jnp.bfloat16), w,
                        preferred_element_type=jnp.float32) + b
            # Masked two-pass LayerNorm (padded columns of z are exactly 0;
            # mask keeps them out of the (z-mean)^2 sum, avoiding the
            # E[z^2]-mean^2 cancellation issue).
            mean = jnp.sum(z, axis=-1, keepdims=True) * inv_h
            d = jnp.where(ln_mask, z - mean, 0.0)
            var = jnp.sum(d * d, axis=-1, keepdims=True) * inv_h
            zn = d * jax.lax.rsqrt(var + 1e-5)    # torch eps / biased var
            h = jnp.maximum(zn * gamma + beta, 0.0)   # padded cols stay 0
            # TODO(synk): dropout omitted — forward corresponds to eval mode.

    # Final linear, computed transposed so the batch lands on lanes:
    #   y8[o, r] = sum_k W_last[o, k] * h[r, k]      (a @ b^T on the MXU)
    w_last = wb[-2][...]                          # bf16 (out_pad8, K)
    b_last = wb[-1][...]                          # f32  (out_pad8, 1)
    y8 = jax.lax.dot_general(
        w_last, h.astype(jnp.bfloat16),
        dimension_numbers=(((1,), (1,)), ((), ())),
        preferred_element_type=jnp.float32) + b_last    # (out_pad8, TN)
    y = y8[:out_true, :]                          # (out_true, TN)
    if sigmoid:
        y = jax.nn.sigmoid(y)
    o_ref[...] = y.astype(o_ref.dtype)


# ---------------------------------------------------------------------------
# Parameter init (mirrors torch.nn.Linear / nn.LayerNorm defaults)
# ---------------------------------------------------------------------------
def init_mlp_params(key, num_layers, in_channels, hid_channels, out_channels):
    hid_pad = _round_up(hid_channels, _LANE)
    out_pad8 = _round_up(out_channels, _SUBLANE)

    weights, biases = [], []

    if num_layers == 1:
        hidden_dims = []
        last_in = in_channels
    else:
        hidden_dims = [(in_channels, hid_channels)]
        hidden_dims += [(hid_channels, hid_channels)] * (num_layers - 2)
        last_in = hid_channels

    # Hidden layers: stored as W^T, shape (K, hid_pad).  First layer keeps the
    # true K = in_channels (x is fed unpadded); later layers pad K to hid_pad
    # to match the 128-wide activation (padded cols of h are 0 -> exact).
    for idx, (cin, cout) in enumerate(hidden_dims):
        key, wk, bk = jax.random.split(key, 3)
        bound = 1.0 / (cin ** 0.5)
        w_t = jax.random.uniform(wk, (cin, cout), jnp.float32, -bound, bound)
        b = jax.random.uniform(bk, (cout,), jnp.float32, -bound, bound)
        cin_p = cin if idx == 0 else _round_up(cin, _LANE)
        cout_p = _round_up(cout, _LANE)
        w_pad = jnp.zeros((cin_p, cout_p), jnp.float32).at[:cin, :cout].set(w_t)
        weights.append(w_pad.astype(jnp.bfloat16))          # MXU operand dtype
        biases.append(jnp.zeros((1, cout_p), jnp.float32).at[0, :cout].set(b))

    # Final layer: torch layout (out, K), out padded to 8 sublanes.
    key, wk, bk = jax.random.split(key, 3)
    bound = 1.0 / (last_in ** 0.5)
    w_last = jax.random.uniform(wk, (out_channels, last_in), jnp.float32,
                                -bound, bound)
    b_last = jax.random.uniform(bk, (out_channels,), jnp.float32, -bound, bound)
    k_p = last_in if num_layers == 1 else hid_pad
    w_last_pad = (jnp.zeros((out_pad8, k_p), jnp.float32)
                  .at[:out_channels, :last_in].set(w_last))
    weights.append(w_last_pad.astype(jnp.bfloat16))
    biases.append(jnp.zeros((out_pad8, 1), jnp.float32)
                  .at[:out_channels, 0].set(b_last))

    # Shared LayerNorm; zero-padded gamma/beta keep padded columns exactly 0.
    gamma = jnp.zeros((1, hid_pad), jnp.float32).at[0, :hid_channels].set(1.0)
    beta = jnp.zeros((1, hid_pad), jnp.float32)

    return {
        "weights": weights, "biases": biases, "gamma": gamma, "beta": beta,
        "num_layers": num_layers, "in_channels": in_channels,
        "hid_channels": hid_channels, "out_channels": out_channels,
    }


# ---------------------------------------------------------------------------
# Forward wrapper: one pallas_call for the whole MLP
# ---------------------------------------------------------------------------
def mlp_forward(x, params, *, sigmoid=False, block_rows=1024):
    num_layers = params["num_layers"]
    hid_true = params["hid_channels"]
    out_true = params["out_channels"]
    weights, biases = params["weights"], params["biases"]

    n, cin = x.shape
    assert cin == params["in_channels"]

    # Row-tile selection:
    #  * n >= 256: lane-dense tiles (multiple of 128), capped by block_rows,
    #    and sized so the grid has >= 2 steps (v7x megacore gets both TCs).
    #  * small n: one tile rounded to the 8-row sublane granule.
    if n >= 2 * _LANE:
        tn = min(block_rows, _round_up(pl.cdiv(n, 2), _LANE))
    else:
        tn = _round_up(max(n, 1), _SUBLANE)
    n_pad = _round_up(n, tn)        # output-only padding; x is never padded
    num_tiles = n_pad // tn

    def const_spec(arr):            # parameters stay resident in VMEM
        return pl.BlockSpec(arr.shape, lambda i: (0, 0))

    in_specs = [pl.BlockSpec((tn, cin), lambda i: (i, 0))]   # x: unpadded
    flat_params = []
    for w, b in zip(weights, biases):
        in_specs += [const_spec(w), const_spec(b)]
        flat_params += [w, b]
    in_specs += [const_spec(params["gamma"]), const_spec(params["beta"])]
    flat_params += [params["gamma"], params["beta"]]

    kernel = functools.partial(
        _fused_mlp_kernel, num_layers=num_layers, hid_true=hid_true,
        out_true=out_true, sigmoid=sigmoid)

    # Output is transposed (out, n_pad): batch on lanes -> lane-dense stores
    # and pure-payload HBM writeback (4 bytes per row for out_channels=1).
    y_t = pl.pallas_call(
        kernel,
        out_shape=jax.ShapeDtypeStruct((out_true, n_pad), jnp.float32),
        grid=(num_tiles,),
        in_specs=in_specs,
        out_specs=pl.BlockSpec((out_true, tn), lambda i: (0, i)),
        compiler_params=pltpu.CompilerParams(
            dimension_semantics=("parallel",)),
    )(x, *flat_params)

    if out_true == 1:               # mimic torch's x.squeeze(-1)
        return y_t[0, :n]
    return y_t[:, :n].T             # squeeze(-1) is a no-op for out > 1


# ---------------------------------------------------------------------------
# Pure-JAX reference (uses the same bf16-rounded weights) for a sanity check
# ---------------------------------------------------------------------------
def mlp_reference(x, params, *, sigmoid=False):
    L = params["num_layers"]
    hid = params["hid_channels"]
    out = params["out_channels"]
    cin = params["in_channels"]
    h = x
    for i in range(L - 1):
        k = cin if i == 0 else hid
        w = params["weights"][i].astype(jnp.float32)[:k, :hid]
        b = params["biases"][i][0, :hid]
        z = h @ w + b
        mean = z.mean(-1, keepdims=True)
        var = ((z - mean) ** 2).mean(-1, keepdims=True)
        zn = (z - mean) / jnp.sqrt(var + 1e-5)
        zn = zn * params["gamma"][0, :hid] + params["beta"][0, :hid]
        h = jnp.maximum(zn, 0.0)
    k = cin if L == 1 else hid
    wl = params["weights"][-1].astype(jnp.float32)[:out, :k]
    bl = params["biases"][-1][:out, 0]
    y = h @ wl.T + bl
    if out == 1:
        y = y[:, 0]
    return jax.nn.sigmoid(y) if sigmoid else y


# ---------------------------------------------------------------------------
if __name__ == "__main__":
    key = jax.random.PRNGKey(0)
    k_in, k_par = jax.random.split(key)

    num_layers = 3
    in_channels = 16
    hid_channels = 32
    out_channels = 1
    N = 8  # small batch of node/edge features

    x = jax.random.normal(k_in, (N, in_channels), jnp.float32)
    params = init_mlp_params(k_par, num_layers, in_channels, hid_channels,
                             out_channels)

    out = mlp_forward(x, params, sigmoid=False)
    jax.block_until_ready(out)

    assert out.shape == (N,), f"unexpected output shape {out.shape}"
    assert bool(jnp.all(jnp.isfinite(out))), "non-finite output"

    ref = mlp_reference(x, params, sigmoid=False)
    assert bool(jnp.allclose(out, ref, atol=5e-2, rtol=5e-2)), \
        f"mismatch vs reference: {out} vs {ref}"

    print("KERNEL_OK")
</pallas_src>

<mosaic_0001>
module attributes {stable_mosaic.version = 11 : i64} {
  func.func @_fused_mlp_kernel(%arg0: i32, %arg1: memref<8x16xf32, #tpu.memory_space<vmem>>, %arg2: memref<16x128xbf16, #tpu.memory_space<vmem>>, %arg3: memref<1x128xf32, #tpu.memory_space<vmem>>, %arg4: memref<128x128xbf16, #tpu.memory_space<vmem>>, %arg5: memref<1x128xf32, #tpu.memory_space<vmem>>, %arg6: memref<8x128xbf16, #tpu.memory_space<vmem>>, %arg7: memref<8x1xf32, #tpu.memory_space<vmem>>, %arg8: memref<1x128xf32, #tpu.memory_space<vmem>>, %arg9: memref<1x128xf32, #tpu.memory_space<vmem>>, %arg10: memref<1x8xf32, #tpu.memory_space<vmem>>) attributes {dimension_semantics = [#tpu.dimension_semantics<parallel>], iteration_bounds = array<i64: 1>, scalar_prefetch = 0 : i64, scratch_operands = 0 : i64, tpu.core_type = #tpu.core_type<tc>, window_params = [{transform_indices = @transform_0, window_bounds = array<i64: 8, 16>}, {pipeline_mode = #tpu.pipeline_mode<synchronous>, transform_indices = @transform_1, window_bounds = array<i64: 16, 128>}, {pipeline_mode = #tpu.pipeline_mode<synchronous>, transform_indices = @transform_2, window_bounds = array<i64: 1, 128>}, {pipeline_mode = #tpu.pipeline_mode<synchronous>, transform_indices = @transform_3, window_bounds = array<i64: 128, 128>}, {pipeline_mode = #tpu.pipeline_mode<synchronous>, transform_indices = @transform_4, window_bounds = array<i64: 1, 128>}, {pipeline_mode = #tpu.pipeline_mode<synchronous>, transform_indices = @transform_5, window_bounds = array<i64: 8, 128>}, {pipeline_mode = #tpu.pipeline_mode<synchronous>, transform_indices = @transform_6, window_bounds = array<i64: 8, 1>}, {pipeline_mode = #tpu.pipeline_mode<synchronous>, transform_indices = @transform_7, window_bounds = array<i64: 1, 128>}, {pipeline_mode = #tpu.pipeline_mode<synchronous>, transform_indices = @transform_8, window_bounds = array<i64: 1, 128>}, {transform_indices = @transform_9, window_bounds = array<i64: 1, 8>}]} {
    %c0 = arith.constant 0 : index
    %c0_0 = arith.constant 0 : index
    %0 = vector.load %arg1[%c0, %c0_0] : memref<8x16xf32, #tpu.memory_space<vmem>>, vector<8x16xf32>
    %c0_1 = arith.constant 0 : index
    %c0_2 = arith.constant 0 : index
    %1 = vector.load %arg8[%c0_1, %c0_2] : memref<1x128xf32, #tpu.memory_space<vmem>>, vector<1x128xf32>
    %c0_3 = arith.constant 0 : index
    %c0_4 = arith.constant 0 : index
    %2 = vector.load %arg9[%c0_3, %c0_4] : memref<1x128xf32, #tpu.memory_space<vmem>>, vector<1x128xf32>
    %3 = tpu.iota {dimensions = array<i32: 1>} : vector<1x128xi32>
    %c32_i32 = arith.constant 32 : i32
    %4 = vector.broadcast %c32_i32 : i32 to vector<1x128xi32>
    %5 = arith.cmpi slt, %3, %4 : vector<1x128xi32>
    %c0_5 = arith.constant 0 : index
    %c0_6 = arith.constant 0 : index
    %6 = vector.load %arg2[%c0_5, %c0_6] : memref<16x128xbf16, #tpu.memory_space<vmem>>, vector<16x128xbf16>
    %c0_7 = arith.constant 0 : index
    %c0_8 = arith.constant 0 : index
    %7 = vector.load %arg3[%c0_7, %c0_8] : memref<1x128xf32, #tpu.memory_space<vmem>>, vector<1x128xf32>
    %8 = arith.truncf %0 : vector<8x16xf32> to vector<8x16xbf16>
    %cst = arith.constant dense<0.000000e+00> : vector<8x128xf32>
    %9 = tpu.matmul %8, %6, %cst {dimension_numbers = #tpu.dot_dimension_numbers<[1], [0], [0], [1], [0, 0, 1, 1], [], []>} : vector<8x16xbf16>, vector<16x128xbf16>, vector<8x128xf32> -> vector<8x128xf32>
    %10 = vector.broadcast %7 : vector<1x128xf32> to vector<8x128xf32>
    %11 = arith.addf %9, %10 : vector<8x128xf32>
    %cst_9 = arith.constant dense<0.000000e+00> : vector<8xf32>
    %12 = vector.multi_reduction <add>, %11, %cst_9 [1] : vector<8x128xf32> to vector<8xf32>
    %13 = vector.shape_cast %12 : vector<8xf32> to vector<8x1xf32>
    %cst_10 = arith.constant 3.125000e-02 : f32
    %14 = vector.broadcast %cst_10 : f32 to vector<8x1xf32>
    %15 = arith.mulf %13, %14 : vector<8x1xf32>
    %16 = vector.broadcast %15 : vector<8x1xf32> to vector<8x128xf32>
    %17 = arith.subf %11, %16 : vector<8x128xf32>
    %cst_11 = arith.constant 0.000000e+00 : f32
    %18 = vector.shape_cast %5 : vector<1x128xi1> to vector<1x128xi1>
    %19 = vector.broadcast %18 : vector<1x128xi1> to vector<8x128xi1>
    %20 = vector.broadcast %cst_11 : f32 to vector<8x128xf32>
    %21 = arith.select %19, %17, %20 : vector<8x128xi1>, vector<8x128xf32>
    %22 = arith.mulf %21, %21 : vector<8x128xf32>
    %cst_12 = arith.constant dense<0.000000e+00> : vector<8xf32>
    %23 = vector.multi_reduction <add>, %22, %cst_12 [1] : vector<8x128xf32> to vector<8xf32>
    %24 = vector.shape_cast %23 : vector<8xf32> to vector<8x1xf32>
    %cst_13 = arith.constant 3.125000e-02 : f32
    %25 = vector.broadcast %cst_13 : f32 to vector<8x1xf32>
    %26 = arith.mulf %24, %25 : vector<8x1xf32>
    %cst_14 = arith.constant 9.99999974E-6 : f32
    %27 = vector.broadcast %cst_14 : f32 to vector<8x1xf32>
    %28 = arith.addf %26, %27 : vector<8x1xf32>
    %29 = math.rsqrt %28 : vector<8x1xf32>
    %30 = vector.broadcast %29 : vector<8x1xf32> to vector<8x128xf32>
    %31 = arith.mulf %21, %30 : vector<8x128xf32>
    %32 = vector.broadcast %1 : vector<1x128xf32> to vector<8x128xf32>
    %33 = arith.mulf %31, %32 : vector<8x128xf32>
    %34 = vector.broadcast %2 : vector<1x128xf32> to vector<8x128xf32>
    %35 = arith.addf %33, %34 : vector<8x128xf32>
    %cst_15 = arith.constant 0.000000e+00 : f32
    %36 = vector.broadcast %cst_15 : f32 to vector<8x128xf32>
    %37 = arith.maximumf %35, %36 : vector<8x128xf32>
    %c0_16 = arith.constant 0 : index
    %c0_17 = arith.constant 0 : index
    %38 = vector.load %arg4[%c0_16, %c0_17] : memref<128x128xbf16, #tpu.memory_space<vmem>>, vector<128x128xbf16>
    %c0_18 = arith.constant 0 : index
    %c0_19 = arith.constant 0 : index
    %39 = vector.load %arg5[%c0_18, %c0_19] : memref<1x128xf32, #tpu.memory_space<vmem>>, vector<1x128xf32>
    %40 = arith.truncf %37 : vector<8x128xf32> to vector<8x128xbf16>
    %cst_20 = arith.constant dense<0.000000e+00> : vector<8x128xf32>
    %41 = tpu.matmul %40, %38, %cst_20 {dimension_numbers = #tpu.dot_dimension_numbers<[1], [0], [0], [1], [0, 0, 1, 1], [], []>} : vector<8x128xbf16>, vector<128x128xbf16>, vector<8x128xf32> -> vector<8x128xf32>
    %42 = vector.broadcast %39 : vector<1x128xf32> to vector<8x128xf32>
    %43 = arith.addf %41, %42 : vector<8x128xf32>
    %cst_21 = arith.constant dense<0.000000e+00> : vector<8xf32>
    %44 = vector.multi_reduction <add>, %43, %cst_21 [1] : vector<8x128xf32> to vector<8xf32>
    %45 = vector.shape_cast %44 : vector<8xf32> to vector<8x1xf32>
    %cst_22 = arith.constant 3.125000e-02 : f32
    %46 = vector.broadcast %cst_22 : f32 to vector<8x1xf32>
    %47 = arith.mulf %45, %46 : vector<8x1xf32>
    %48 = vector.broadcast %47 : vector<8x1xf32> to vector<8x128xf32>
    %49 = arith.subf %43, %48 : vector<8x128xf32>
    %cst_23 = arith.constant 0.000000e+00 : f32
    %50 = vector.shape_cast %5 : vector<1x128xi1> to vector<1x128xi1>
    %51 = vector.broadcast %50 : vector<1x128xi1> to vector<8x128xi1>
    %52 = vector.broadcast %cst_23 : f32 to vector<8x128xf32>
    %53 = arith.select %51, %49, %52 : vector<8x128xi1>, vector<8x128xf32>
    %54 = arith.mulf %53, %53 : vector<8x128xf32>
    %cst_24 = arith.constant dense<0.000000e+00> : vector<8xf32>
    %55 = vector.multi_reduction <add>, %54, %cst_24 [1] : vector<8x128xf32> to vector<8xf32>
    %56 = vector.shape_cast %55 : vector<8xf32> to vector<8x1xf32>
    %cst_25 = arith.constant 3.125000e-02 : f32
    %57 = vector.broadcast %cst_25 : f32 to vector<8x1xf32>
    %58 = arith.mulf %56, %57 : vector<8x1xf32>
    %cst_26 = arith.constant 9.99999974E-6 : f32
    %59 = vector.broadcast %cst_26 : f32 to vector<8x1xf32>
    %60 = arith.addf %58, %59 : vector<8x1xf32>
    %61 = math.rsqrt %60 : vector<8x1xf32>
    %62 = vector.broadcast %61 : vector<8x1xf32> to vector<8x128xf32>
    %63 = arith.mulf %53, %62 : vector<8x128xf32>
    %64 = vector.broadcast %1 : vector<1x128xf32> to vector<8x128xf32>
    %65 = arith.mulf %63, %64 : vector<8x128xf32>
    %66 = vector.broadcast %2 : vector<1x128xf32> to vector<8x128xf32>
    %67 = arith.addf %65, %66 : vector<8x128xf32>
    %cst_27 = arith.constant 0.000000e+00 : f32
    %68 = vector.broadcast %cst_27 : f32 to vector<8x128xf32>
    %69 = arith.maximumf %67, %68 : vector<8x128xf32>
    %c0_28 = arith.constant 0 : index
    %c0_29 = arith.constant 0 : index
    %70 = vector.load %arg6[%c0_28, %c0_29] : memref<8x128xbf16, #tpu.memory_space<vmem>>, vector<8x128xbf16>
    %c0_30 = arith.constant 0 : index
    %c0_31 = arith.constant 0 : index
    %71 = vector.load %arg7[%c0_30, %c0_31] : memref<8x1xf32, #tpu.memory_space<vmem>>, vector<8x1xf32>
    %72 = arith.truncf %69 : vector<8x128xf32> to vector<8x128xbf16>
    %cst_32 = arith.constant dense<0.000000e+00> : vector<8x8xf32>
    %73 = tpu.matmul %70, %72, %cst_32 {dimension_numbers = #tpu.dot_dimension_numbers<[1], [1], [0], [0], [0, 0, 1, 0], [], []>} : vector<8x128xbf16>, vector<8x128xbf16>, vector<8x8xf32> -> vector<8x8xf32>
    %74 = vector.broadcast %71 : vector<8x1xf32> to vector<8x8xf32>
    %75 = arith.addf %73, %74 : vector<8x8xf32>
    %76 = vector.extract_strided_slice %75 {offsets = [0, 0], sizes = [1, 8], strides = [1, 1]} : vector<8x8xf32> to vector<1x8xf32>
    %c0_33 = arith.constant 0 : index
    %c0_34 = arith.constant 0 : index
    %77 = vector.load %arg10[%c0_33, %c0_34] : memref<1x8xf32, #tpu.memory_space<vmem>>, vector<1x8xf32>
    tpu.vector_store %arg10[%c0_33, %c0_34], %76 {strides = array<i32>} : memref<1x8xf32, #tpu.memory_space<vmem>>, vector<1x8xf32>,
    return
  }
  func.func @transform_0(%arg0: i32) -> (i32, i32) {
    %c0_i32 = arith.constant 0 : i32
    %c0_i32_0 = arith.constant 0 : i32
    return %arg0, %c0_i32 : i32, i32
  }
  func.func @transform_1(%arg0: i32) -> (i32, i32) {
    %c0_i32 = arith.constant 0 : i32
    %c0_i32_0 = arith.constant 0 : i32
    %c0_i32_1 = arith.constant 0 : i32
    return %c0_i32, %c0_i32_0 : i32, i32
  }
  func.func @transform_2(%arg0: i32) -> (i32, i32) {
    %c0_i32 = arith.constant 0 : i32
    %c0_i32_0 = arith.constant 0 : i32
    %c0_i32_1 = arith.constant 0 : i32
    return %c0_i32, %c0_i32_0 : i32, i32
  }
  func.func @transform_3(%arg0: i32) -> (i32, i32) {
    %c0_i32 = arith.constant 0 : i32
    %c0_i32_0 = arith.constant 0 : i32
    %c0_i32_1 = arith.constant 0 : i32
    return %c0_i32, %c0_i32_0 : i32, i32
  }
  func.func @transform_4(%arg0: i32) -> (i32, i32) {
    %c0_i32 = arith.constant 0 : i32
    %c0_i32_0 = arith.constant 0 : i32
    %c0_i32_1 = arith.constant 0 : i32
    return %c0_i32, %c0_i32_0 : i32, i32
  }
  func.func @transform_5(%arg0: i32) -> (i32, i32) {
    %c0_i32 = arith.constant 0 : i32
    %c0_i32_0 = arith.constant 0 : i32
    %c0_i32_1 = arith.constant 0 : i32
    return %c0_i32, %c0_i32_0 : i32, i32
  }
  func.func @transform_6(%arg0: i32) -> (i32, i32) {
    %c0_i32 = arith.constant 0 : i32
    %c0_i32_0 = arith.constant 0 : i32
    %c0_i32_1 = arith.constant 0 : i32
    return %c0_i32, %c0_i32_0 : i32, i32
  }
  func.func @transform_7(%arg0: i32) -> (i32, i32) {
    %c0_i32 = arith.constant 0 : i32
    %c0_i32_0 = arith.constant 0 : i32
    %c0_i32_1 = arith.constant 0 : i32
    return %c0_i32, %c0_i32_0 : i32, i32
  }
  func.func @transform_8(%arg0: i32) -> (i32, i32) {
    %c0_i32 = arith.constant 0 : i32
    %c0_i32_0 = arith.constant 0 : i32
    %c0_i32_1 = arith.constant 0 : i32
    return %c0_i32, %c0_i32_0 : i32, i32
  }
  func.func @transform_9(%arg0: i32) -> (i32, i32) {
    %c0_i32 = arith.constant 0 : i32
    %c0_i32_0 = arith.constant 0 : i32
    return %c0_i32, %arg0 : i32, i32
  }
}

</mosaic_0001>

<bundles_post_ra>
// kernel: tpu_custom_call.1
= control target key start
LH: loop header
LB: loop body
LE: loop exit
PB: predicated region body
PF: predicated region fallthrough
CT: control target
= control target key end

     0   :  { %14 = vsyncpa [#allocation3], 0  ;;  %s620_s0 = inlined_call_operand.vmem [shape: f32[8,16], index: 0, kind: input, shape index: {}]   ;;  %s621_s1 = inlined_call_operand.hbm [shape: bf16[16,128], index: 1, kind: input, shape index: {}]   ;;  %s622_s2 = inlined_call_operand.vmem [shape: f32[1,128], index: 2, kind: input, shape index: {}]   ;;  %s623_s3 = inlined_call_operand.hbm [shape: bf16[128,128], index: 3, kind: input, shape index: {}]   ;;  %s624_s4 = inlined_call_operand.vmem [shape: f32[1,128], index: 4, kind: input, shape index: {}]   ;;  %s625_s5 = inlined_call_operand.vmem [shape: bf16[8,128], index: 5, kind: input, shape index: {}]   ;;  %s626_s6 = inlined_call_operand.vmem [shape: f32[8,1], index: 6, kind: input, shape index: {}]   ;;  %s627_s7 = inlined_call_operand.vmem [shape: f32[1,128], index: 7, kind: input, shape index: {}]   ;;  %s628_s8 = inlined_call_operand.vmem [shape: f32[1,128], index: 8, kind: input, shape index: {}]   ;;  %s629_s9 = inlined_call_operand.hbm [shape: f32[1,8], index: 9, kind: output, shape index: {}]  }
   0x1   :  { %15 = vsyncpa [#allocation6], 0 }
   0x2   :  { %16 = vsyncpa [#allocation4], 0  ;;  %s503_s30 = smov [#allocation2]   ;;  %s431_s13 = scalar_lea.hbm %s621_s1, 128 }
   0x3   :  { %s24_s10 = sshll.u32 %s503_s30, 4  ;;  %p432_p0 = scmp.ne.s32.totalorder %s621_s1, %s431_s13  ;;  %s25_s10 = int_to_ptr.vmem [resolvable:$true] %s24_s10 }
   0x4   :  { %p435_p1 = scmp.lt.u32.totalorder %s431_s13, %s621_s1 }
   0x6   :  { %p437_p2 = pnand %p435_p1, %p432_p0 }
   0x8   :  { %440 = shalt.err (!%p437_p2)
}
   0x9   :  { %s441_s18 = scalar_lea.vmem %s25_s10, 128  ;;  %p446_p4 = scmp.lt.s32.totalorder %s25_s10, %s25_s10 }
   0xa   :  { %p442_p3 = scmp.ne.s32.totalorder %s25_s10, %s441_s18  ;;  %p447_p5 = scmp.lt.s32.totalorder %s441_s18, %s441_s18 }
   0xc   :  { %p448_p6 = por %p447_p5, %p446_p4 }
   0xe   :  { %p449_p7 = pnand %p448_p6, %p442_p3 }
  0x10   :  { %452 = shalt.err (!%p449_p7)
}
  0x11   :  { %s504_s19 = smov 64   ;;  %s505_s20 = smov 4  }
  0x12   :  { %30 = dma.hbm_to_vmem [thread:$0]  %s621_s1, 128, %s25_s10, [#allocation3], %s504_s19, %s504_s19, %s505_s20  }
  0x13   :  { %s506_s23 = smov [#allocation5]   ;;  %s453_s27 = scalar_lea.hbm %s623_s3, 1024 }
  0x14   :  { %s38_s24 = sshll.u32 %s506_s23, 4  ;;  %p454_p8 = scmp.ne.s32.totalorder %s623_s3, %s453_s27  ;;  %s39_s24 = int_to_ptr.vmem [resolvable:$true] %s38_s24 }
  0x15   :  { %p457_p9 = scmp.lt.u32.totalorder %s453_s27, %s623_s3 }
  0x17   :  { %p459_p10 = pnand %p457_p9, %p454_p8 }
  0x19   :  { %462 = shalt.err (!%p459_p10)
}
  0x1a   :  { %s463_s12 = scalar_lea.vmem %s39_s24, 1024  ;;  %p468_p12 = scmp.lt.s32.totalorder %s39_s24, %s39_s24 }
  0x1b   :  { %p464_p11 = scmp.ne.s32.totalorder %s39_s24, %s463_s12  ;;  %p469_p13 = scmp.lt.s32.totalorder %s463_s12, %s463_s12 }
  0x1d   :  { %p470_p0 = por %p469_p13, %p468_p12 }
  0x1f   :  { %p471_p1 = pnand %p470_p0, %p464_p11 }
  0x21   :  { %474 = shalt.err (!%p471_p1)
}
  0x22   :  { %44 = dma.hbm_to_vmem [thread:$0]  %s623_s3, 1024, %s39_s24, [#allocation6], %s504_s19, %s504_s19, %s505_s20  }
  0x23   :  { %497 = dma.done.wait [#allocation3], 128  }
  0x24   :  { %498 = vsyncadd [#allocation3], 4294967168 }
  0x25   :  { %499 = dma.done.wait [#allocation6], 1024  }
  0x26   :  { %500 = vsyncadd [#allocation6], 4294966272  ;;  %v507_v0 = vmov 0.0   ;;  %vm508_vm0 = vmmov 0   ;;  %v418_v1 = vld [vmem:[#allocation2] sm:$0xff]   ;;  %vm84_vm1 = vcmask 130048   ;;  %v65_v12 = vlaneseq }
  0x27   :  { %377 = vmatprep.subr.bf16.mxu0 %v507_v0  ;;  %379 = vmatprep.mubr.msk.bf16.mxu0 %vm508_vm0, %v507_v0  ;;  %v62_v2 = vld [vmem:[%s620_s0] sm:$0xff]  ;;  %v419_v10 = vld [vmem:[#allocation5] sm:$0xff]   ;;  %v420_v11 = vld [vmem:[#allocation5 + $0x8] sm:$0xff]   ;;  %v509_v48 = vmov 0   ;;  %vm332_vm3 = vcmask 57344  }
  0x28   :  { %383 = vmatprep.subr.bf16.mxu1 %v507_v0  ;;  %399 = vmatprep.mubr.msk.bf16.mxu1 %vm508_vm0, %v507_v0  ;;  %v71_v3 = vpack.c.bf16 %v62_v2, %v62_v2  ;;  %v350_v4 = vld [vmem:[%s622_s2] ss:$0 sm:$0xff]  ;;  %v66_v13 = vand.u32 127, %v65_v12  ;;  %v421_v19 = vld [vmem:[#allocation5 + $0x10] sm:$0xff]   ;;  %v423_v21 = vld [vmem:[#allocation5 + $0x20] sm:$0xff]  }
  0x29   :  { %378 = vmatpush3.bf16.msra.mxu0 %v418_v1  ;;  %384 = vmatpush3.bf16.msra.mxu1 %v419_v10  ;;  %v422_v20 = vld [vmem:[#allocation5 + $0x18] sm:$0xff]   ;;  %v424_v22 = vld [vmem:[#allocation5 + $0x28] sm:$0xff]   ;;  %v425_v23 = vld [vmem:[#allocation5 + $0x30] sm:$0xff]  }
  0x2a   :  { %403 = vmatprep.subr.bf16.mxu0 %v507_v0  ;;  %385 = vmatprep.subr.bf16.mxu1 %v507_v0  ;;  %vm67_vm2 = vcmp.lt.s32.totalorder %v66_v13, 32  ;;  %v426_v24 = vld [vmem:[#allocation5 + $0x38] sm:$0xff]  }
  0x2b   :  { %v353_v29 = vld [vmem:[%s627_s7] ss:$0 sm:$0xff]  ;;  %417 = vset.pattern.permute.xlu0 %v509_v48 }
  0x2c   :  { %380 = vmatmul.mubr.msk.bf16.vlgmr.msra.gmra.mrb[0].mxu0 %vm84_vm1, %v71_v3  ;;  %v354_v31 = vld [vmem:[%s628_s8] ss:$0 sm:$0xff] }
  0x2d   :  { %405 = vmatprep.mubr.msk.bf16.mxu0 %vm508_vm0, %v507_v0  ;;  %386 = vmatpush3.bf16.msra.mxu1 %v420_v11  ;;  %v355_v36 = vld [vmem:[%s624_s4] ss:$0 sm:$0xff] }
  0x2e   :  { %387 = vmatprep.subr.bf16.mxu1 %v507_v0  ;;  %v285_v47 = vld [vmem:[%s626_s6] sm:$0xff]  ;;  %s510_s6 = smov [#allocation7]  }
  0x2f   :  { %v284_v58 = vld [vmem:[%s625_s5] sm:$0xf]  ;;  %s340_s21 = sshll.u32 %s510_s6, 4  ;;  %s341_s21 = int_to_ptr.vmem [resolvable:$true] %s340_s21 }
  0x30   :  { %s475_s22 = scalar_lea.vmem %s341_s21, 16  ;;  %s479_s23 = scalar_lea.vmem %s341_s21, 32 }
  0x31   :  { %388 = vmatpush3.bf16.msra.mxu1 %v421_v19  ;;  %p476_p2 = scmp.ne.s32.totalorder %s341_s21, %s475_s22  ;;  %p480_p3 = scmp.lt.s32.totalorder %s341_s21, %s341_s21 }
  0x32   :  { %389 = vmatprep.subr.bf16.mxu1 %v507_v0  ;;  %p481_p4 = scmp.lt.s32.totalorder %s479_s23, %s475_s22 }
  0x34   :  { %p482_p5 = por %p481_p4, %p480_p3 }
  0x35   :  { %390 = vmatpush3.bf16.msra.mxu1 %v422_v20 }
  0x36   :  { %391 = vmatprep.subr.bf16.mxu1 %v507_v0  ;;  %p483_p6 = pnand %p482_p5, %p476_p2 }
  0x39   :  { %392 = vmatpush3.bf16.msra.mxu1 %v423_v21 }
  0x3a   :  { %393 = vmatprep.subr.bf16.mxu1 %v507_v0 }
  0x3d   :  { %394 = vmatpush3.bf16.msra.mxu1 %v424_v22 }
  0x3e   :  { %395 = vmatprep.subr.bf16.mxu1 %v507_v0 }
  0x41   :  { %396 = vmatpush3.bf16.msra.mxu1 %v425_v23 }
  0x42   :  { %397 = vmatprep.subr.bf16.mxu1 %v507_v0 }
  0x45   :  { %398 = vmatpush3.bf16.msra.mxu1 %v426_v24 }
  0xff   :  { %v122_v5 = vpop.f32.mrb[0].mxu0 }
 0x100   :  { %v123_v6 = vadd.f32 %v350_v4, %v122_v5  ;;  %v381_v7 = vpop.f32.mrb[1].mxu0 }
 0x101   :  { %v125_v8 = vpop.f32.mrb[2].mxu0 }
 0x102   :  { %128 = vadd.xlane.f32.xlu0 %v123_v6  ;;  %v382_v9 = vpop.f32.mrb[3].mxu0 }
 0x18f   :  { %v129_v14 = vpop.xlane.xlu0 %128 }
 0x190   :  { %v130_v15 = vmul.f32 0.03125, %v129_v14 }
 0x192   :  { %v131_v16 = vsub.f32 %v123_v6, %v130_v15 }
 0x194   :  { %v134_v17 = vsel %vm67_vm2, %v131_v16, 0.0 }
 0x195   :  { %v135_v18 = vmul.f32 %v134_v17, %v134_v17 }
 0x197   :  { %136 = vadd.xlane.f32.xlu0 %v135_v18 }
 0x1ad   :  { %289 = vperm.xlu0 %417, %v285_v47  }
 0x224   :  { %v137_v25 = vpop.xlane.xlu0 %136 }
 0x225   :  { %v138_v26 = vmul.f32 0.03125, %v137_v25 }
 0x227   :  { %v139_v27 = vadd.f32 1e-05, %v138_v26 }
 0x229   :  { %427 = vrsqrt.f32 %v139_v27 }
 0x22c   :  { %v290_v59 = vpop.permute.xlu0 %289 }
 0x233   :  { %v428_v28 = vpop.eup %427 }
 0x234   :  { %v141_v30 = vmul.f32 %v428_v28, %v134_v17 }
 0x236   :  { %v148_v32 = vmul.f32 %v353_v29, %v141_v30 }
 0x238   :  { %v155_v33 = vadd.f32 %v354_v31, %v148_v32 }
 0x23a   :  { %v156_v34 = vmax.f32 %v155_v33, 0.0 }
 0x23c   :  { %v174_v35 = vpack.c.bf16 %v156_v34, %v156_v34 }
 0x23e   :  { %400 = vmatmul.mubr.bf16.vlgmr.msra.gmra.mrb[0].mxu1 %v174_v35 }
 0x311   :  { %v263_v37 = vpop.f32.mrb[0].mxu1 }
 0x312   :  { %v264_v38 = vadd.f32 %v355_v36, %v263_v37  ;;  %v401_v39 = vpop.f32.mrb[1].mxu1 }
 0x313   :  { %v266_v40 = vpop.f32.mrb[2].mxu1 }
 0x314   :  { %269 = vadd.xlane.f32.xlu1 %v264_v38  ;;  %v402_v41 = vpop.f32.mrb[3].mxu1 }
 0x3a1   :  { %v270_v42 = vpop.xlane.xlu1 %269 }
 0x3a2   :  { %v271_v43 = vmul.f32 0.03125, %v270_v42 }
 0x3a4   :  { %v272_v44 = vsub.f32 %v264_v38, %v271_v43 }
 0x3a6   :  { %v273_v45 = vsel %vm67_vm2, %v272_v44, 0.0 }
 0x3a7   :  { %v274_v46 = vmul.f32 %v273_v45, %v273_v45 }
 0x3a9   :  { %275 = vadd.xlane.f32.xlu1 %v274_v46 }
 0x436   :  { %v276_v49 = vpop.xlane.xlu1 %275 }
 0x437   :  { %v277_v50 = vmul.f32 0.03125, %v276_v49 }
 0x439   :  { %v278_v51 = vadd.f32 1e-05, %v277_v50 }
 0x43b   :  { %429 = vrsqrt.f32 %v278_v51 }
 0x445   :  { %v430_v52 = vpop.eup %429 }
 0x446   :  { %v280_v53 = vmul.f32 %v430_v52, %v273_v45 }
 0x448   :  { %v281_v54 = vmul.f32 %v353_v29, %v280_v53 }
 0x44a   :  { %v282_v55 = vadd.f32 %v354_v31, %v281_v54 }
 0x44c   :  { %v283_v56 = vmax.f32 %v282_v55, 0.0 }
 0x44e   :  { %v286_v57 = vpack.c.bf16 %v283_v56, %v283_v56 }
 0x450   :  { %404 = vmatpush3.bf16.xpose.msra.mxu0 %v286_v57 }
 0x457   :  { %406 = vmatmul.mubr.bf16.vlgmr.msra.gmra.mrb[4].mxu0 %v284_v58 }
 0x52a   :  { %v326_v60 = vpop.f32.mrb[4].mxu0 }
 0x52b   :  { %v327_v61 = vadd.f32 %v326_v60, %v290_v59  ;;  %v407_v62 = vpop.f32.mrb[5].mxu0 }
 0x52c   :  { %v329_v63 = vpop.f32.mrb[6].mxu0 }
 0x52d   :  { %v408_v0 = vpop.f32.mrb[7].mxu0  ;;  %333 = vst.msk [vmem:[#allocation7] sm:$0x1] %vm332_vm3, %v327_v61 }
 0x52e   :  { %486 = shalt.err (!%p483_p6)
}
 0x52f   :  { %s487_s25 = scalar_lea.hbm %s629_s9, 16 }
 0x530   :  { %p488_p7 = scmp.ne.s32.totalorder %s629_s9, %s487_s25  ;;  %p491_p8 = scmp.lt.u32.totalorder %s487_s25, %s629_s9 }
 0x532   :  { %p493_p9 = pnand %p491_p8, %p488_p7 }
 0x534   :  { %496 = shalt.err (!%p493_p9)
}
 0x535   :  { %343 = dma.vmem_to_hbm [thread:$0]  %s341_s21, 16, %s629_s9, [#allocation4]  }
 0x536   :  { %501 = dma.done.wait [#allocation4], 16  }
 0x537   :  { %502 = vsyncadd [#allocation4], 4294967280 }
 0x538   :  { %347 = vsyncpa [#allocation3], 1 }
 0x539   :  { %348 = vsyncpa [#allocation6], 1 }
 0x53a   :  { %349 = vsyncpa [#allocation4], 1 }

</bundles_post_ra>
